<compile_context>
chip_gen: v6e
topology: v6e:2x2x1
jax: 0.10.0
libtpu: 0.0.40
codegen_flags: <defaults>
</compile_context>

<pallas_src>
import functools

import jax
import jax.numpy as jnp
from jax.experimental import pallas as pl
from jax.experimental.pallas import tpu as pltpu


def _linear_kernel(x_ref, w_ref, b_ref, o_ref):
    # x_ref: (TB, H); w_ref: (H, L); b_ref: (1, L); o_ref: (TB, L)
    o_ref[...] = (
        jnp.dot(x_ref[...], w_ref[...], preferred_element_type=jnp.float32)
        + b_ref[...].astype(jnp.float32)
    ).astype(o_ref.dtype)


def _linear_ce_kernel(x_ref, w_ref, b_ref, lab_ref, msk_ref, cw_ref,
                      o_ref, loss_ref, num_sc, den_sc, *, n_tokens):
    i = pl.program_id(0)

    @pl.when(i == 0)
    def _():
        num_sc[...] = jnp.zeros_like(num_sc)
        den_sc[...] = jnp.zeros_like(den_sc)

    # Linear (+bias), f32 accumulation.
    logits = (
        jnp.dot(x_ref[...], w_ref[...], preferred_element_type=jnp.float32)
        + b_ref[...].astype(jnp.float32)
    )                                                          # (TB, L) f32
    o_ref[...] = logits.astype(o_ref.dtype)

    TB, L = logits.shape
    # Row validity for remainder tiles + attention mask.
    row = i * TB + jax.lax.broadcasted_iota(jnp.int32, (TB, 1), 0)
    valid = row < n_tokens
    active = valid & (msk_ref[...] == 1)                       # (TB, 1) bool

    # One-hot label pick (TPU-friendly gather).
    lab = lab_ref[...]                                         # (TB, 1) int32
    col = jax.lax.broadcasted_iota(jnp.int32, (TB, L), 1)
    onehot = (col == lab).astype(jnp.float32)                  # (TB, L)

    # Numerically stable log-softmax NLL.
    m = jnp.max(logits, axis=-1, keepdims=True)
    lse = m + jnp.log(jnp.sum(jnp.exp(logits - m), axis=-1, keepdims=True))
    picked = jnp.sum(logits * onehot, axis=-1, keepdims=True)
    nll = lse - picked                                         # (TB, 1)

    # Per-row class weight (all-ones if no loss_weight was given).
    wrow = jnp.sum(cw_ref[...].astype(jnp.float32) * onehot,
                   axis=-1, keepdims=True)                     # (TB, 1)

    num_sc[...] += jnp.sum(jnp.where(active, nll * wrow, 0.0), keepdims=True)
    den_sc[...] += jnp.sum(jnp.where(active, wrow, 0.0), keepdims=True)

    @pl.when(i == pl.num_programs(0) - 1)
    def _():
        loss_ref[...] = num_sc[...] / den_sc[...]


def subword_classification_head(hidden_states, weight, bias,
                                attention_mask=None, labels=None,
                                loss_weight=None):
    """hidden_states: (B, S, H); weight: (L, H) torch-layout; bias: (L,).

    Returns (logits,) or (loss, logits) matching the PyTorch forward.
    """
    B, S, H = hidden_states.shape
    L = weight.shape[0]
    N = B * S

    x = hidden_states.reshape(N, H)            # contiguous reshape (bitcast)
    w_t = weight.T                             # (H, L)
    b2d = bias.reshape(1, L)

    # Token tile: multiple of 8 sublanes, large enough to amortize per-step
    # overhead; remainder tiles are masked inside the kernel.
    if N % 8 == 0:
        TB = min(512, N)
    else:
        TB = N                                 # single full block
    num_tiles = pl.cdiv(N, TB)

    x_spec = pl.BlockSpec((TB, H), lambda i: (i, 0))
    w_spec = pl.BlockSpec((H, L), lambda i: (0, 0))      # resident
    b_spec = pl.BlockSpec((1, L), lambda i: (0, 0))      # resident
    out_logits_spec = pl.BlockSpec((TB, L), lambda i: (i, 0))

    if labels is None:
        logits_flat = pl.pallas_call(
            _linear_kernel,
            out_shape=jax.ShapeDtypeStruct((N, L), hidden_states.dtype),
            grid_spec=pltpu.PrefetchScalarGridSpec(
                num_scalar_prefetch=0,
                grid=(num_tiles,),
                in_specs=[x_spec, w_spec, b_spec],
                out_specs=out_logits_spec),
            compiler_params=pltpu.CompilerParams(
                dimension_semantics=("parallel",),
                vmem_limit_bytes=48 * 1024 * 1024),
        )(x, w_t, b2d)
        return (logits_flat.reshape(B, S, L),)

    labels2d = labels.reshape(N, 1).astype(jnp.int32)
    if attention_mask is None:
        mask2d = jnp.ones((N, 1), jnp.int32)
    else:
        mask2d = attention_mask.reshape(N, 1).astype(jnp.int32)
    if loss_weight is None:
        cw2d = jnp.ones((1, L), jnp.float32)
    else:
        cw2d = loss_weight.reshape(1, L).astype(jnp.float32)

    logits_flat, loss = pl.pallas_call(
        functools.partial(_linear_ce_kernel, n_tokens=N),
        out_shape=(jax.ShapeDtypeStruct((N, L), hidden_states.dtype),
                   jax.ShapeDtypeStruct((1, 1), jnp.float32)),
        grid_spec=pltpu.PrefetchScalarGridSpec(
            num_scalar_prefetch=0,
            grid=(num_tiles,),
            in_specs=[x_spec, w_spec, b_spec,
                      pl.BlockSpec((TB, 1), lambda i: (i, 0)),   # labels
                      pl.BlockSpec((TB, 1), lambda i: (i, 0)),   # mask
                      pl.BlockSpec((1, L), lambda i: (0, 0))],   # class weights
            out_specs=[out_logits_spec,
                       pl.BlockSpec((1, 1), lambda i: (0, 0))],
            scratch_shapes=[pltpu.VMEM((1, 1), jnp.float32),     # loss numerator
                            pltpu.VMEM((1, 1), jnp.float32)]),   # loss denominator
        compiler_params=pltpu.CompilerParams(
            dimension_semantics=("arbitrary",),  # loss accumulates across tiles
            vmem_limit_bytes=48 * 1024 * 1024),
    )(x, w_t, b2d, labels2d, mask2d, cw2d)

    return (loss.reshape(()), logits_flat.reshape(B, S, L))


if __name__ == "__main__":
    # Small, module-consistent shapes: batch=2, seq=8, hidden=32, labels=5.
    B, S, H, L = 2, 8, 32, 5
    key = jax.random.PRNGKey(0)
    k_x, k_w, k_b, k_l, k_m, k_cw = jax.random.split(key, 6)

    hidden_states = jax.random.normal(k_x, (B, S, H), dtype=jnp.float32)
    bound = 1.0 / (H ** 0.5)
    weight = jax.random.uniform(k_w, (L, H), jnp.float32, -bound, bound)
    bias = jax.random.uniform(k_b, (L,), jnp.float32, -bound, bound)
    labels = jax.random.randint(k_l, (B, S), 0, L)
    attention_mask = (jax.random.uniform(k_m, (B, S)) > 0.3).astype(jnp.int32)
    attention_mask = attention_mask.at[0, 0].set(1)   # ensure >=1 active token
    loss_weight = jax.random.uniform(k_cw, (L,), jnp.float32, 0.5, 1.5)

    # Without labels: (logits,)
    (logits,) = subword_classification_head(hidden_states, weight, bias)
    jax.block_until_ready(logits)

    # With labels + attention_mask + class weights: (loss, logits)
    loss, logits2 = subword_classification_head(
        hidden_states, weight, bias, attention_mask=attention_mask,
        labels=labels, loss_weight=loss_weight)
    jax.block_until_ready((loss, logits2))

    # With labels only (no mask, no class weights)
    loss_nm, _ = subword_classification_head(hidden_states, weight, bias,
                                             labels=labels)
    jax.block_until_ready(loss_nm)

    # Plain-JAX reference
    ref_logits = hidden_states @ weight.T + bias                    # (B, S, L)
    logp = jax.nn.log_softmax(ref_logits.reshape(-1, L), axis=-1)
    lab_flat = labels.reshape(-1)
    nll = -jnp.take_along_axis(logp, lab_flat[:, None], axis=-1)[:, 0]
    w_y = loss_weight[lab_flat]
    act = attention_mask.reshape(-1) == 1
    ref_loss = (jnp.sum(jnp.where(act, nll * w_y, 0.0))
                / jnp.sum(jnp.where(act, w_y, 0.0)))
    ref_loss_nm = jnp.mean(nll)

    assert jnp.allclose(logits, ref_logits, atol=1e-5), "logits mismatch (no labels)"
    assert jnp.allclose(logits2, ref_logits, atol=1e-5), "logits mismatch (with labels)"
    assert jnp.allclose(loss, ref_loss, atol=1e-5), "weighted/masked CE loss mismatch"
    assert jnp.allclose(loss_nm, ref_loss_nm, atol=1e-5), "plain CE loss mismatch"

    print("KERNEL_OK")
</pallas_src>

<mosaic_0001>
module attributes {stable_mosaic.version = 11 : i64} {
  func.func @_linear_kernel(%arg0: i32, %arg1: memref<16x32xf32, #tpu.memory_space<vmem>>, %arg2: memref<32x5xf32, #tpu.memory_space<vmem>>, %arg3: memref<1x5xf32, #tpu.memory_space<vmem>>, %arg4: memref<16x5xf32, #tpu.memory_space<vmem>>) attributes {dimension_semantics = [#tpu.dimension_semantics<parallel>], iteration_bounds = array<i64: 1>, scalar_prefetch = 0 : i64, scratch_operands = 0 : i64, tpu.core_type = #tpu.core_type<tc>, window_params = [{transform_indices = @transform_0, window_bounds = array<i64: 16, 32>}, {pipeline_mode = #tpu.pipeline_mode<synchronous>, transform_indices = @transform_1, window_bounds = array<i64: 32, 5>}, {pipeline_mode = #tpu.pipeline_mode<synchronous>, transform_indices = @transform_2, window_bounds = array<i64: 1, 5>}, {transform_indices = @transform_3, window_bounds = array<i64: 16, 5>}]} {
    %c0 = arith.constant 0 : index
    %c0_0 = arith.constant 0 : index
    %0 = vector.load %arg1[%c0, %c0_0] : memref<16x32xf32, #tpu.memory_space<vmem>>, vector<16x32xf32>
    %c0_1 = arith.constant 0 : index
    %c0_2 = arith.constant 0 : index
    %1 = vector.load %arg2[%c0_1, %c0_2] : memref<32x5xf32, #tpu.memory_space<vmem>>, vector<32x5xf32>
    %cst = arith.constant dense<0.000000e+00> : vector<16x5xf32>
    %2 = tpu.matmul %0, %1, %cst {dimension_numbers = #tpu.dot_dimension_numbers<[1], [0], [0], [1], [0, 0, 1, 1], [], []>} : vector<16x32xf32>, vector<32x5xf32>, vector<16x5xf32> -> vector<16x5xf32>
    %c0_3 = arith.constant 0 : index
    %c0_4 = arith.constant 0 : index
    %3 = vector.load %arg3[%c0_3, %c0_4] : memref<1x5xf32, #tpu.memory_space<vmem>>, vector<1x5xf32>
    %4 = vector.broadcast %3 : vector<1x5xf32> to vector<16x5xf32>
    %5 = arith.addf %2, %4 : vector<16x5xf32>
    %c0_5 = arith.constant 0 : index
    %c0_6 = arith.constant 0 : index
    %6 = vector.load %arg4[%c0_5, %c0_6] : memref<16x5xf32, #tpu.memory_space<vmem>>, vector<16x5xf32>
    tpu.vector_store %arg4[%c0_5, %c0_6], %5 {strides = array<i32>} : memref<16x5xf32, #tpu.memory_space<vmem>>, vector<16x5xf32>,
    return
  }
  func.func @transform_0(%arg0: i32) -> (i32, i32) {
    %c0_i32 = arith.constant 0 : i32
    %c0_i32_0 = arith.constant 0 : i32
    return %arg0, %c0_i32 : i32, i32
  }
  func.func @transform_1(%arg0: i32) -> (i32, i32) {
    %c0_i32 = arith.constant 0 : i32
    %c0_i32_0 = arith.constant 0 : i32
    %c0_i32_1 = arith.constant 0 : i32
    return %c0_i32, %c0_i32_0 : i32, i32
  }
  func.func @transform_2(%arg0: i32) -> (i32, i32) {
    %c0_i32 = arith.constant 0 : i32
    %c0_i32_0 = arith.constant 0 : i32
    %c0_i32_1 = arith.constant 0 : i32
    return %c0_i32, %c0_i32_0 : i32, i32
  }
  func.func @transform_3(%arg0: i32) -> (i32, i32) {
    %c0_i32 = arith.constant 0 : i32
    %c0_i32_0 = arith.constant 0 : i32
    return %arg0, %c0_i32 : i32, i32
  }
}

</mosaic_0001>

<bundles_post_ra>
// kernel: tpu_custom_call.1
= control target key start
LH: loop header
LB: loop body
LE: loop exit
PB: predicated region body
PF: predicated region fallthrough
CT: control target
= control target key end

     0   :  { %vm27_vm0 = vcmask 261120   ;;  %vm109_vm1 = vcmask 39936   ;;  %s185_s1 = inlined_call_operand.vmem [shape: f32[32,5], index: 1, kind: input, shape index: {}]   ;;  %s186_s0 = inlined_call_operand.vmem [shape: f32[16,32], index: 0, kind: input, shape index: {}]   ;;  %s187_s2 = inlined_call_operand.vmem [shape: f32[1,5], index: 2, kind: input, shape index: {}]   ;;  %s188_s3 = inlined_call_operand.vmem [shape: f32[16,5], index: 3, kind: output, shape index: {}]  }
   0x1   :  { %v19_v0 = vld [vmem:[%s185_s1 + $0x18] sm:$0xff]  ;;  %v18_v1 = vld [vmem:[%s185_s1 + $0x10] sm:$0xff]  ;;  %v14_v2 = vld [vmem:[%s186_s0] sm:$0xff] }
   0x2   :  { %125 = vmatprep.subr.mxu0 %v19_v0  ;;  %v17_v3 = vld [vmem:[%s185_s1 + $0x8] sm:$0xff]  ;;  %133 = vmatprep.mubr.msk.f32.mxu0 %vm27_vm0, %v14_v2  ;;  %v16_v4 = vld [vmem:[%s185_s1] sm:$0xff] }
   0x3   :  { %126 = vmatpush3.msra.mxu0 %v19_v0  ;;  %v15_v5 = vld [vmem:[%s186_s0 + $0x8] sm:$0xff]  ;;  %v116_v6 = vld [vmem:[%s187_s2] ss:$0 sm:$0xff] }
   0x4   :  { %127 = vmatprep.subr.mxu0 %v18_v1 }
   0x5   :  { %128 = vmatpush3.msra.mxu0 %v18_v1 }
   0x6   :  { %129 = vmatprep.subr.mxu0 %v17_v3 }
   0x7   :  { %130 = vmatpush3.msra.mxu0 %v17_v3 }
   0x8   :  { %131 = vmatprep.subr.mxu0 %v16_v4 }
   0x9   :  { %132 = vmatpush3.msra.mxu0 %v16_v4 }
   0xa   :  { %134 = vmatmul.mubr.msk.f32.vlgmr.msra.gmra.mxu0 %vm27_vm0, %v15_v5 }
  0xca   :  { %v135_v7 = vpop.f32.mrf.mxu0 }
  0xcb   :  { %v106_v8 = vadd.f32 %v135_v7, %v116_v6 }
  0xcc   :  { %v100_v9 = vpop.f32.mrf.mxu0 }
  0xcd   :  { %111 = vst.msk [vmem:[%s188_s3 + $0x8] sm:$0xff] %vm109_vm1, %v106_v8  ;;  %v101_v10 = vadd.f32 %v116_v6, %v100_v9 }
  0xcf   :  { %110 = vst.msk [vmem:[%s188_s3] sm:$0xff] %vm109_vm1, %v101_v10 }

</bundles_post_ra>
